<compile_context>
chip_gen: v6e
topology: v6e:2x2x1
jax: 0.10.0
libtpu: 0.0.40
codegen_flags: <defaults>
</compile_context>

<pallas_src>
import functools

import jax
import jax.numpy as jnp
from jax.experimental import pallas as pl
from jax.experimental.pallas import tpu as pltpu


def _dino_loss_kernel(student_ref, teacher_ref, o_ref, tsum_ref, acc_ref,
                      *, inv_temp, neg_inv_batch):
    b = pl.program_id(0)            # batch-tile index   (outer)
    s = pl.program_id(1)            # student-crop index (inner)
    nb = pl.num_programs(0)
    ns = pl.num_programs(1)

    # Zero the scalar accumulator at the very first grid step.
    @pl.when((b == 0) & (s == 0))
    def _():
        acc_ref[...] = jnp.zeros_like(acc_ref)

    # Teacher crops summed once per batch tile (block is constant across the
    # inner student axis) and cached in VMEM scratch.
    @pl.when(s == 0)
    def _():
        tsum_ref[...] = jnp.sum(teacher_ref[...].astype(jnp.float32), axis=0)

    # log_softmax(student / temp) along the last (lane) dim, f32 math.
    st = student_ref[0].astype(jnp.float32) * inv_temp          # (tile_b, D)
    m = jnp.max(st, axis=-1, keepdims=True)
    shifted = st - m
    lse = jnp.log(jnp.sum(jnp.exp(shifted), axis=-1, keepdims=True))
    lsm = shifted - lse

    # Accumulate sum over rows & classes of (sum_t teacher) * log_softmax(s).
    acc_ref[...] += jnp.sum(tsum_ref[...] * lsm, keepdims=True)

    # Final scale: total_loss = -(1/B) * accumulated sum.
    @pl.when((b == nb - 1) & (s == ns - 1))
    def _():
        o_ref[...] = acc_ref[...] * neg_inv_batch


def dino_loss_forward(student_output_list, teacher_out_softmaxed_centered_list,
                      *, student_temp=0.1, tile_b=128):
    """Returns the scalar DINO loss. Each list entry is (B, out_dim)."""
    student = jnp.stack(student_output_list, axis=0)                   # (S,B,D)
    teacher = jnp.stack(teacher_out_softmaxed_centered_list, axis=0)   # (T,B,D)
    S, B, D = student.shape
    T, Bt, Dt = teacher.shape
    assert (Bt, Dt) == (B, D), "student/teacher batch & class dims must match"

    tile_b = min(tile_b, B)
    assert B % tile_b == 0, "batch must be divisible by the batch tile"
    nb = B // tile_b

    kernel = functools.partial(
        _dino_loss_kernel,
        inv_temp=float(1.0 / student_temp),
        neg_inv_batch=float(-1.0 / B),
    )

    out = pl.pallas_call(
        kernel,
        out_shape=jax.ShapeDtypeStruct((1, 1), jnp.float32),
        grid_spec=pltpu.PrefetchScalarGridSpec(
            num_scalar_prefetch=0,
            grid=(nb, S),
            in_specs=[
                # one student crop, one batch tile, full (lane-dense) class dim
                pl.BlockSpec((1, tile_b, D), lambda b, s: (s, b, 0)),
                # all teacher crops for this batch tile; constant across s, so
                # it is fetched only once per batch tile
                pl.BlockSpec((T, tile_b, D), lambda b, s: (0, b, 0)),
            ],
            out_specs=pl.BlockSpec((1, 1), lambda b, s: (0, 0)),
            scratch_shapes=[
                pltpu.VMEM((tile_b, D), jnp.float32),   # cached sum of teacher crops
                pltpu.VMEM((1, 1), jnp.float32),        # scalar loss accumulator
            ],
        ),
        compiler_params=pltpu.CompilerParams(
            # scalar accumulator is carried across both grid axes
            dimension_semantics=("arbitrary", "arbitrary"),
        ),
    )(student, teacher)
    return out[0, 0]


def _reference_loss(student_list, teacher_list, student_temp=0.1):
    # Literal pure-JAX port of DINOLoss.forward for checking.
    total = jnp.float32(0.0)
    for s in student_list:
        lsm = jax.nn.log_softmax(s.astype(jnp.float32) / student_temp, axis=-1)
        for t in teacher_list:
            total = total - jnp.mean(jnp.sum(t.astype(jnp.float32) * lsm, axis=-1))
    return total


if __name__ == "__main__":
    # Small shapes consistent with the module: per-crop batch B, class dim D
    # (lane-dense multiple of 128), 2 student crops, 2 teacher crops.
    B, D = 16, 256
    n_student, n_teacher = 2, 2
    student_temp = 0.1

    key = jax.random.PRNGKey(0)
    keys = jax.random.split(key, n_student + n_teacher)
    student_list = [
        jax.random.normal(keys[i], (B, D), dtype=jnp.float32)
        for i in range(n_student)
    ]
    # teacher outputs are already softmaxed (and centered) probabilities
    teacher_list = [
        jax.nn.softmax(jax.random.normal(keys[n_student + i], (B, D),
                                         dtype=jnp.float32), axis=-1)
        for i in range(n_teacher)
    ]

    loss = dino_loss_forward(student_list, teacher_list,
                             student_temp=student_temp)
    loss = jax.block_until_ready(loss)

    ref = _reference_loss(student_list, teacher_list, student_temp)
    assert loss.shape == ()
    assert jnp.allclose(loss, ref, atol=1e-2, rtol=1e-4), (loss, ref)

    print("KERNEL_OK")
</pallas_src>

<mosaic_0001>
module attributes {stable_mosaic.version = 11 : i64} {
  func.func @_dino_loss_kernel(%arg0: i32, %arg1: i32, %arg2: memref<1x16x256xf32, #tpu.memory_space<vmem>>, %arg3: memref<2x16x256xf32, #tpu.memory_space<vmem>>, %arg4: memref<1x1xf32, #tpu.memory_space<vmem>>, %arg5: memref<16x256xf32, #tpu.memory_space<vmem>>, %arg6: memref<1x1xf32, #tpu.memory_space<vmem>>) attributes {dimension_semantics = [#tpu.dimension_semantics<arbitrary>, #tpu.dimension_semantics<arbitrary>], iteration_bounds = array<i64: 1, 2>, scalar_prefetch = 0 : i64, scratch_operands = 2 : i64, tpu.core_type = #tpu.core_type<tc>, window_params = [{transform_indices = @transform_0, window_bounds = array<i64: 1, 16, 256>}, {transform_indices = @transform_1, window_bounds = array<i64: 2, 16, 256>}, {pipeline_mode = #tpu.pipeline_mode<synchronous>, transform_indices = @transform_2, window_bounds = array<i64: 1, 1>}]} {
    %c0_i32 = arith.constant 0 : i32
    %0 = arith.cmpi eq, %arg0, %c0_i32 : i32
    %c0_i32_0 = arith.constant 0 : i32
    %1 = arith.cmpi eq, %arg1, %c0_i32_0 : i32
    %2 = arith.andi %0, %1 : i1
    %3 = arith.extui %2 : i1 to i32
    %c0_i32_1 = arith.constant 0 : i32
    %4 = arith.cmpi ne, %3, %c0_i32_1 : i32
    scf.if %4 {
      %cst_17 = arith.constant 0.000000e+00 : f32
      %37 = vector.broadcast %cst_17 : f32 to vector<1x1xf32>
      %c0_18 = arith.constant 0 : index
      %c0_19 = arith.constant 0 : index
      %38 = vector.load %arg6[%c0_18, %c0_19] : memref<1x1xf32, #tpu.memory_space<vmem>>, vector<1x1xf32>
      tpu.vector_store %arg6[%c0_18, %c0_19], %37 {strides = array<i32>} : memref<1x1xf32, #tpu.memory_space<vmem>>, vector<1x1xf32>,
    } else {
    }
    %c0_i32_2 = arith.constant 0 : i32
    %5 = arith.cmpi eq, %arg1, %c0_i32_2 : i32
    %6 = arith.extui %5 : i1 to i32
    %c0_i32_3 = arith.constant 0 : i32
    %7 = arith.cmpi ne, %6, %c0_i32_3 : i32
    scf.if %7 {
      %c0_17 = arith.constant 0 : index
      %c0_18 = arith.constant 0 : index
      %c0_19 = arith.constant 0 : index
      %37 = vector.load %arg3[%c0_17, %c0_18, %c0_19] : memref<2x16x256xf32, #tpu.memory_space<vmem>>, vector<2x16x256xf32>
      %cst_20 = arith.constant dense<0.000000e+00> : vector<16x256xf32>
      %38 = vector.multi_reduction <add>, %37, %cst_20 [0] : vector<2x16x256xf32> to vector<16x256xf32>
      %c0_21 = arith.constant 0 : index
      %c0_22 = arith.constant 0 : index
      %39 = vector.load %arg5[%c0_21, %c0_22] : memref<16x256xf32, #tpu.memory_space<vmem>>, vector<16x256xf32>
      tpu.vector_store %arg5[%c0_21, %c0_22], %38 {strides = array<i32>} : memref<16x256xf32, #tpu.memory_space<vmem>>, vector<16x256xf32>,
    } else {
    }
    %c0 = arith.constant 0 : index
    %c0_4 = arith.constant 0 : index
    %c0_5 = arith.constant 0 : index
    %8 = vector.load %arg2[%c0, %c0_4, %c0_5] : memref<1x16x256xf32, #tpu.memory_space<vmem>>, vector<1x16x256xf32>
    %9 = vector.shape_cast %8 : vector<1x16x256xf32> to vector<16x256xf32>
    %cst = arith.constant 1.000000e+01 : f32
    %10 = vector.broadcast %cst : f32 to vector<16x256xf32>
    %11 = arith.mulf %9, %10 : vector<16x256xf32>
    %cst_6 = arith.constant dense<0xFF800000> : vector<16xf32>
    %12 = vector.multi_reduction <maximumf>, %11, %cst_6 [1] : vector<16x256xf32> to vector<16xf32>
    %13 = vector.shape_cast %12 : vector<16xf32> to vector<16x1xf32>
    %14 = vector.broadcast %13 : vector<16x1xf32> to vector<16x256xf32>
    %15 = arith.subf %11, %14 : vector<16x256xf32>
    %16 = math.exp %15 : vector<16x256xf32>
    %cst_7 = arith.constant dense<0.000000e+00> : vector<16xf32>
    %17 = vector.multi_reduction <add>, %16, %cst_7 [1] : vector<16x256xf32> to vector<16xf32>
    %18 = vector.shape_cast %17 : vector<16xf32> to vector<16x1xf32>
    %19 = math.log %18 : vector<16x1xf32>
    %20 = vector.broadcast %19 : vector<16x1xf32> to vector<16x256xf32>
    %21 = arith.subf %15, %20 : vector<16x256xf32>
    %c0_8 = arith.constant 0 : index
    %c0_9 = arith.constant 0 : index
    %22 = vector.load %arg6[%c0_8, %c0_9] : memref<1x1xf32, #tpu.memory_space<vmem>>, vector<1x1xf32>
    %c0_10 = arith.constant 0 : index
    %c0_11 = arith.constant 0 : index
    %23 = vector.load %arg5[%c0_10, %c0_11] : memref<16x256xf32, #tpu.memory_space<vmem>>, vector<16x256xf32>
    %24 = arith.mulf %23, %21 : vector<16x256xf32>
    %25 = vector.shape_cast %24 : vector<16x256xf32> to vector<1x16x256xf32>
    %cst_12 = arith.constant dense<0.000000e+00> : vector<1xf32>
    %26 = vector.multi_reduction <add>, %25, %cst_12 [1, 2] : vector<1x16x256xf32> to vector<1xf32>
    %27 = vector.shape_cast %26 : vector<1xf32> to vector<1x1x1xf32>
    %28 = vector.extract %27[0, 0, 0] : f32 from vector<1x1x1xf32>
    %29 = vector.broadcast %28 : f32 to vector<1x1xf32>
    %30 = arith.addf %22, %29 : vector<1x1xf32>
    %c0_13 = arith.constant 0 : index
    %c0_14 = arith.constant 0 : index
    %31 = vector.load %arg6[%c0_13, %c0_14] : memref<1x1xf32, #tpu.memory_space<vmem>>, vector<1x1xf32>
    tpu.vector_store %arg6[%c0_13, %c0_14], %30 {strides = array<i32>} : memref<1x1xf32, #tpu.memory_space<vmem>>, vector<1x1xf32>,
    %c0_i32_15 = arith.constant 0 : i32
    %32 = arith.cmpi eq, %arg0, %c0_i32_15 : i32
    %c1_i32 = arith.constant 1 : i32
    %33 = arith.cmpi eq, %arg1, %c1_i32 : i32
    %34 = arith.andi %32, %33 : i1
    %35 = arith.extui %34 : i1 to i32
    %c0_i32_16 = arith.constant 0 : i32
    %36 = arith.cmpi ne, %35, %c0_i32_16 : i32
    scf.if %36 {
      %c0_17 = arith.constant 0 : index
      %c0_18 = arith.constant 0 : index
      %37 = vector.load %arg6[%c0_17, %c0_18] : memref<1x1xf32, #tpu.memory_space<vmem>>, vector<1x1xf32>
      %cst_19 = arith.constant -6.250000e-02 : f32
      %38 = vector.broadcast %cst_19 : f32 to vector<1x1xf32>
      %39 = arith.mulf %37, %38 : vector<1x1xf32>
      %c0_20 = arith.constant 0 : index
      %c0_21 = arith.constant 0 : index
      %40 = vector.load %arg4[%c0_20, %c0_21] : memref<1x1xf32, #tpu.memory_space<vmem>>, vector<1x1xf32>
      tpu.vector_store %arg4[%c0_20, %c0_21], %39 {strides = array<i32>} : memref<1x1xf32, #tpu.memory_space<vmem>>, vector<1x1xf32>,
    } else {
    }
    return
  }
  func.func @transform_0(%arg0: i32, %arg1: i32) -> (i32, i32, i32) {
    %c0_i32 = arith.constant 0 : i32
    %c0_i32_0 = arith.constant 0 : i32
    return %arg1, %arg0, %c0_i32 : i32, i32, i32
  }
  func.func @transform_1(%arg0: i32, %arg1: i32) -> (i32, i32, i32) {
    %c0_i32 = arith.constant 0 : i32
    %c0_i32_0 = arith.constant 0 : i32
    %c0_i32_1 = arith.constant 0 : i32
    return %c0_i32, %arg0, %c0_i32_0 : i32, i32, i32
  }
  func.func @transform_2(%arg0: i32, %arg1: i32) -> (i32, i32) {
    %c0_i32 = arith.constant 0 : i32
    %c0_i32_0 = arith.constant 0 : i32
    %c0_i32_1 = arith.constant 0 : i32
    return %c0_i32, %c0_i32_0 : i32, i32
  }
}

</mosaic_0001>

<bundles_post_ra>
// kernel: tpu_custom_call.1
= control target key start
LH: loop header
LB: loop body
LE: loop exit
PB: predicated region body
PF: predicated region fallthrough
CT: control target
= control target key end

     0   :  { %7 = vsyncpa [#allocation5], 0  ;;  %s795_s0 = inlined_call_operand.hbm [shape: f32[2,16,256], index: 0, kind: input, shape index: {}]   ;;  %s796_s1 = inlined_call_operand.hbm [shape: f32[2,16,256], index: 1, kind: input, shape index: {}]   ;;  %s797_s2 = inlined_call_operand.hbm [shape: f32[1,1], index: 2, kind: output, shape index: {}]  }
   0x1   :  { %9 = vsyncpa [#allocation5 + $0x1], 0 }
   0x2   :  { %10 = vsyncpa [#allocation8], 0 }
   0x3   :  { %11 = vsyncpa [#allocation6], 0  ;;  %s643_s9 = smov 0   ;;  %s645_s10 = smov 0  }
   0x4   :  { %s647_s11 = smov 0   ;;  %s649_s12 = smov 0  }
   0x5   :  { %s651_s13 = smov 0   ;;  %s653_s14 = smov 0  }
   0x6 LB: > { %s374_s15 = sadd.s32 4294967295, %s620_s14   ;;  %p51_p0 = scmp.ne.s32.totalorder %s604_s10, %s600_s9  ;;  %s620_s14 = sphi %s653_s14, %s17_s14   ;;  %s616_s13 = sphi %s651_s13, %s808_s13   ;;  %s612_s12 = sphi %s649_s12, %s807_s12   ;;  %s608_s11 = sphi %s647_s11, %s806_s11   ;;  %s604_s10 = sphi %s645_s10, %s805_s10   ;;  %s600_s9 = sphi %s643_s9, %s804_s9  }
   0x7   : > { %p675_p1 = scmp.eq.s32.totalorder %s374_s15, 0  ;;  %p375_p2 = scmp.ge.s32.totalorder %s620_s14, 1 }
   0x8   : > { %p109_p3 = scmp.lt.s32.totalorder %s620_s14, 3  ;;  %s622_s19 = smov [#allocation7]  }
   0x9   : > { %p683_p4 = por %p675_p1, %p51_p0  ;;  %s125_s20 = sshll.u32 %s622_s19, 4  ;;  %s126_s20 = int_to_ptr.vmem [resolvable:$true] %s125_s20 }
   0xa   : > { %p687_p5 = pnand %p375_p2, %p109_p3  ;;  %s26_s22 = sadd.s32 1, %s616_s13 }
   0xb   : > { %s495_s23 = scalar_lea.vmem %s126_s20, 1024  ;;  %p503_p12 = scmp.lt.s32.totalorder %s126_s20, %s126_s20 }
   0xc   : > { %p406_p6 = pneg %p687_p5  ;;  %p496_p9 = scmp.ne.s32.totalorder %s126_s20, %s495_s23 }
   0xd   : > { %p504_p13 = scmp.lt.s32.totalorder %s495_s23, %s495_s23 }
   0xe   : > { %p695_p7 = pnand %p406_p6, %p675_p1 }
   0xf   : > { %p505_p0 = por %p504_p13, %p503_p12 }
  0x10   : > { %p486_p8 = pneg %p695_p7 }
  0x12   : > { %p498_p10 = pnand %p496_p9, %p486_p8 }
  0x14   : > { %p499_p11 = pneg %p498_p10 }
  0x16   : > { %p506_p2 = pnand %p505_p0, %p499_p11 }
  0x18   : > { %509 = shalt.err (!%p506_p2)
}
  0x19   : > { %s623_s24 = smov 256   ;;  %s624_s25 = smov 16  }
  0x1a   : > { %409 = dma.hbm_to_vmem [thread:$0]  (!%p695_p7), %s796_s1, 1024, %s126_s20, [#allocation8], %s623_s24, %s623_s24, %s624_s25  }
  0x1b   : > { %p27_p3 = scmp.ge.s32.totalorder %s26_s22, 2  ;;  %s38_s28 = sadd.s32 1, %s608_s11 }
  0x1c   : > { %p45_p6 = scmp.ne.s32.totalorder %s608_s11, %s604_s10  ;;  %p46_p8 = scmp.eq.s32.totalorder %s620_s14, 0 }
  0x1d   : > { %s810_s22 = smov (%p27_p3, %s26_s22), 0  ;;  %p415_p10 = scmp.lt.s32.totalorder %s620_s14, 2 }
  0x1e   : > { %p47_p9 = por %p46_p8, %p45_p6  ;;  %s33_s29 = ssub.s32 %s616_s13, %s810_s22 }
  0x1f   : > { %s139_s30 = sand.u32 1, %s608_s11   ;;  %p36_p11 = scmp.eq.s32.totalorder %s33_s29, 0 }
  0x20   : > { %s378_s3 = sshll.u32 %s139_s30, 5  ;;  %s391_s4 = sshll.u32 %s616_s13, 9 }
  0x21   : > { %s722_s5 = scalar_select %p36_p11, %s608_s11, %s38_s28  }
  0x22   : > { %s152_s8 = scalar_lea.hbm %s795_s0, %s391_s4  ;;  %s143_s9 = scalar_lea.vmem [#allocation4], %s378_s3 }
  0x23   : > { %s153_s19 = sshll.u32 %s143_s9, 4  ;;  %p727_p7 = pnand %p415_p10, %p47_p9  ;;  %s154_s19 = int_to_ptr.vmem [resolvable:$true] %s153_s19 }
  0x24   : > { %s140_s21 = scalar_lea.sflag [#allocation5], %s139_s30  ;;  %s523_s23 = scalar_lea.vmem %s154_s19, 512 }
  0x25   : > { %p512_p12 = pneg %p727_p7  ;;  %p524_p13 = scmp.ne.s32.totalorder %s154_s19, %s523_s23 }
  0x26   : > { %s625_s26 = smov [#allocation4]  }
  0x27   : > { %p526_p0 = pnand %p524_p13, %p512_p12  ;;  %s528_s27 = sshll.u32 %s625_s26, 4  ;;  %s529_s27 = int_to_ptr.vmem [resolvable:$false] %s528_s27 }
  0x28   : > { %s530_s28 = scalar_lea.vmem %s529_s27, 1024  ;;  %p531_p3 = scmp.lt.s32.totalorder %s154_s19, %s529_s27 }
  0x29   : > { %p527_p2 = pneg %p526_p0  ;;  %p532_p6 = scmp.lt.s32.totalorder %s530_s28, %s523_s23 }
  0x2b   : > { %p533_p8 = por %p532_p6, %p531_p3 }
  0x2d   : > { %p534_p9 = pnand %p533_p8, %p527_p2 }
  0x2f   : > { %537 = shalt.err (!%p534_p9)
}
  0x30   : > { %413 = dma.hbm_to_vmem [thread:$0]  (!%p727_p7), %s152_s8, 512, %s154_s19, %s140_s21, %s623_s24, %s623_s24, %s624_s25  }
  0x31   : > { %165 = sbr.rel (%p687_p5) target bundleno = 637 (0x27d), region = 28  ;;  %s167_s29 = sand.u32 (!%p687_p5), 1, %s604_s10  }
  0x32   : > { %s382_s30 = sshll.u32 (!%p687_p5), %s167_s29, 5  ;;  %s168_s3 = scalar_lea.sflag (!%p687_p5), [#allocation5], %s167_s29 }
  0x33   : > { %s741_s4 = scalar_lea.vmem (!%p687_p5), [#allocation4], %s382_s30 }
  0x36   : > { %587 = dma.done.wait (%p683_p4), %s168_s3, 512  }
  0x37   : > { %589 = vsyncadd (%p683_p4), %s168_s3, 4294966784 }
  0x38   : > { %591 = dma.done.wait (%p675_p1), [#allocation8], 1024  }
  0x39   : > { %593 = vsyncadd (%p675_p1), [#allocation8], 4294966272  ;;  %p194_p5 = scmp.eq.s32.totalorder %s612_s12, 0 }
  0x3a   : > { %vm199_vm0 = vcmask (%p194_p5), 0   ;;  %v626_v0 = vmov (%p194_p5), 0.0  }
  0x3b   : > { %198 = sbr.rel (!%p194_p5) target bundleno = 64 (0x40), region = 40  ;;  %200 = vst.msk [vmem:[#allocation3] sm:$0x1] (%p194_p5), %vm199_vm0, %v626_v0 }
  0x40 PF: > { %p385_p10 = scmp.ne.s32.totalorder %s612_s12, 0 }
  0x42   : > { %203 = sbr.rel (%p385_p10) target bundleno = 78 (0x4e), region = 44 }
  0x47   : > { %v204_v1 = vld [vmem:[#allocation7] sm:$0xff]  ;;  %v205_v3 = vld [vmem:[#allocation7 + $0x8] sm:$0xff]  ;;  %v206_v6 = vld [vmem:[#allocation7 + $0x10] sm:$0xff] }
  0x48   : > { %v208_v2 = vld [vmem:[#allocation7 + $0x20] sm:$0xff]  ;;  %v209_v5 = vld [vmem:[#allocation7 + $0x28] sm:$0xff]  ;;  %v210_v7 = vld [vmem:[#allocation7 + $0x30] sm:$0xff] }
  0x49   : > { %v212_v4 = vadd.f32 %v208_v2, %v204_v1  ;;  %v213_v8 = vadd.f32 %v209_v5, %v205_v3  ;;  %v214_v9 = vadd.f32 %v210_v7, %v206_v6  ;;  %v207_v10 = vld [vmem:[#allocation7 + $0x18] sm:$0xff] }
  0x4a   : > { %v211_v11 = vld [vmem:[#allocation7 + $0x38] sm:$0xff] }
  0x4b   : > { %216 = vst [vmem:[#allocation2 + $0x10] sm:$0xff] %v212_v4  ;;  %v215_v12 = vadd.f32 %v211_v11, %v207_v10  ;;  %217 = vst [vmem:[#allocation2] sm:$0xff] %v213_v8 }
  0x4c   : > { %218 = vst [vmem:[#allocation2 + $0x18] sm:$0xff] %v214_v9 }
  0x4d   : > { %219 = vst [vmem:[#allocation2 + $0x8] sm:$0xff] %v215_v12 }
  0x4e PF: > { %v220_v13 = vld [vmem:[%s741_s4] sm:$0xff]  ;;  %v221_v14 = vld [vmem:[%s741_s4 + $0x8] sm:$0xff]  ;;  %v222_v15 = vld [vmem:[%s741_s4 + $0x10] sm:$0xff]  ;;  %p285_p1 = scmp.eq.s32.totalorder %s612_s12, 1  ;;  %vm283_vm1 = vcmask 0  }
  0x4f   : > { %v224_v16 = vmul.f32 10.0, %v220_v13  ;;  %v225_v17 = vmul.f32 10.0, %v221_v14  ;;  %v223_v18 = vld [vmem:[%s741_s4 + $0x18] sm:$0xff]  ;;  %v226_v19 = vmul.f32 10.0, %v222_v15 }
  0x50   : > { %v227_v20 = vmul.f32 10.0, %v223_v18  ;;  %v260_v3 = vld [vmem:[#allocation3] sm:$0x1] }
  0x51   : > { %v228_v21 = vmax.f32 %v224_v16, %v225_v17 }
  0x52   : > { %v231_v22 = vmax.f32 %v226_v19, %v227_v20  ;;  %v261_v43 = vld [vmem:[#allocation2 + $0x10] sm:$0xff]  ;;  %v262_v44 = vld [vmem:[#allocation2] sm:$0xff] }
  0x53   : > { %229 = vmax.xlane.f32.xlu0 %v228_v21  ;;  %v263_v51 = vld [vmem:[#allocation2 + $0x18] sm:$0xff] }
  0x54   : > { %v264_v54 = vld [vmem:[#allocation2 + $0x8] sm:$0xff] }
  0x57   : > { %232 = vmax.xlane.f32.xlu0 %v231_v22 }
  0xdc   : > { %v230_v23 = vpop.xlane.xlu0 %229 }
  0xdd   : > { %v234_v24 = vsub.f32 %v224_v16, %v230_v23  ;;  %v235_v25 = vsub.f32 %v225_v17, %v230_v23 }
  0xdf   : > { %v238_v26 = vmul.f32 1.442695, %v234_v24  ;;  %v240_v27 = vmul.f32 1.442695, %v235_v25 }
  0xe0   : > { %v233_v28 = vpop.xlane.xlu0 %232 }
  0xe1   : > { %472 = vpow2.f32 %v238_v26  ;;  %v236_v29 = vsub.f32 %v226_v19, %v233_v28  ;;  %v237_v30 = vsub.f32 %v227_v20, %v233_v28 }
  0xe2   : > { %474 = vpow2.f32 %v240_v27 }
  0xe3   : > { %v242_v31 = vmul.f32 1.442695, %v236_v29  ;;  %v244_v32 = vmul.f32 1.442695, %v237_v30 }
  0xe5   : > { %476 = vpow2.f32 %v242_v31 }
  0xe6   : > { %478 = vpow2.f32 %v244_v32 }
  0xee   : > { %v473_v33 = vpop.eup %472 }
  0xef   : > { %v475_v34 = vpop.eup %474 }
  0xf0   : > { %v246_v35 = vadd.f32 %v475_v34, %v473_v33 }
  0xf2   : > { %v477_v36 = vpop.eup %476  ;;  %247 = vadd.xlane.f32.xlu1 %v246_v35 }
  0xf3   : > { %v479_v37 = vpop.eup %478 }
  0xf4   : > { %v249_v38 = vadd.f32 %v479_v37, %v477_v36 }
  0xf6   : > { %250 = vadd.xlane.f32.xlu1 %v249_v38 }
 0x17b   : > { %v248_v39 = vpop.xlane.xlu1 %247 }
 0x17c   : > { %480 = vlog2.f32 %v248_v39 }
 0x17f   : > { %v251_v40 = vpop.xlane.xlu1 %250 }
 0x180   : > { %482 = vlog2.f32 %v251_v40 }
 0x189   : > { %v481_v41 = vpop.eup %480 }
 0x18a   : > { %v253_v42 = vmul.f32 0.6931472, %v481_v41 }
 0x18c   : > { %v256_v45 = vsub.f32 %v234_v24, %v253_v42  ;;  %v257_v46 = vsub.f32 %v235_v25, %v253_v42 }
 0x18d   : > { %v483_v47 = vpop.eup %482 }
 0x18e   : > { %v255_v48 = vmul.f32 0.6931472, %v483_v47  ;;  %v265_v49 = vmul.f32 %v261_v43, %v256_v45  ;;  %v266_v50 = vmul.f32 %v262_v44, %v257_v46 }
 0x190   : > { %v258_v52 = vsub.f32 %v236_v29, %v255_v48  ;;  %v259_v53 = vsub.f32 %v237_v30, %v255_v48  ;;  %v269_v56 = vadd.f32 %v266_v50, %v265_v49 }
 0x192   : > { %v267_v55 = vmul.f32 %v263_v51, %v258_v52  ;;  %v268_v57 = vmul.f32 %v264_v54, %v259_v53 }
 0x194   : > { %v270_v58 = vadd.f32 %v269_v56, %v267_v55 }
 0x196   : > { %v271_v59 = vadd.f32 %v270_v58, %v268_v57 }
 0x198   : > { %272 = vadd.xlane.f32.xlu0 %v271_v59 }
 0x221   : > { %v273_v60 = vpop.xlane.xlu0 %272 }
 0x222   : > { %v274_v61 = vrot.slane %v273_v60, 4 }
 0x224   : > { %v275_v62 = vadd.f32 %v274_v61, %v273_v60 }
 0x226   : > { %v276_v63 = vrot.slane %v275_v62, 2 }
 0x228   : > { %v277_v0 = vadd.f32 %v276_v63, %v275_v62 }
 0x22a   : > { %v278_v1 = vrot.slane %v277_v0, 1 }
 0x22c   : > { %v279_v2 = vadd.f32 %v278_v1, %v277_v0 }
 0x22e   : > { %394 = vpush %v279_v2 }
 0x25f   : > { %s395_s16 = spop %394  ;;  %289 = sbr.rel (!%p285_p1) target bundleno = 622 (0x26e), region = 48 }
 0x260   : > { %v281_v4 = vstv %s395_s16 }
 0x261   : > { %v282_v5 = vadd.f32 %v281_v4, %v260_v3 }
 0x263   : > { %284 = vst.msk [vmem:[#allocation3] sm:$0x1] %vm283_vm1, %v282_v5 }
 0x26a   : > { %v290_v6 = vld [vmem:[#allocation3] sm:$0x1] }
 0x26b   : > { %v291_v7 = vmul.f32 -0.0625, %v290_v6 }
 0x26d   : > { %292 = vst.msk [vmem:[#allocation9] sm:$0x1] %vm283_vm1, %v291_v7 }
 0x26e PF: > { %p762_p4 = scmp.eq.s32.totalorder %s374_s15, 1  ;;  %s627_s18 = smov [#allocation9]  }
 0x26f   : > { %s300_s24 = sshll.u32 %s627_s18, 4  ;;  %s301_s24 = int_to_ptr.vmem [resolvable:$true] %s300_s24 }
 0x270   : > { %s538_s25 = scalar_lea.vmem %s301_s24, 16  ;;  %s544_s12 = scalar_lea.vmem %s301_s24, 32 }
 0x271   : > { %p539_p11 = scmp.ne.s32.totalorder %s301_s24, %s538_s25  ;;  %p545_p13 = scmp.lt.s32.totalorder %s301_s24, %s301_s24 }
 0x272   : > { %p546_p0 = scmp.lt.s32.totalorder %s544_s12, %s538_s25 }
 0x273   : > { %p540_p7 = pnand %p539_p11, %p762_p4 }
 0x274   : > { %p547_p2 = por %p546_p0, %p545_p13 }
 0x275   : > { %p541_p12 = pneg %p540_p7 }
 0x277   : > { %p548_p3 = pnand %p547_p2, %p541_p12 }
 0x279   : > { %551 = shalt.err (!%p548_p3)
}
 0x27a   : > { %403 = dma.vmem_to_hbm [thread:$0]  (%p762_p4), %s301_s24, 16, %s797_s2, [#allocation6]  }
 0x27b   : > { %595 = dma.done.wait (%p762_p4), [#allocation6], 16  }
 0x27c   : > { %597 = vsyncadd (%p762_p4), [#allocation6], 4294967280 }
 0x27d PF: > { %s17_s14 = sadd.s32 1, %s620_s14   ;;  %s804_s9 = smov %s604_s10 }
 0x27e   : > { %p14_p6 = scmp.ge.s32.totalorder %s17_s14, 4   ;;  %s805_s10 = smov %s608_s11 }
 0x27f   : > { %s806_s11 = smov %s722_s5  ;;  %s807_s12 = smov %s616_s13 }
 0x280   : > { %s808_s13 = smov %s810_s22  ;;  %16 = sbr.rel (!%p14_p6) target bundleno = 6 (0x6), region = 82 }
 0x285   :  { %313 = vsyncpa [#allocation5], 1 }
 0x286   :  { %315 = vsyncpa [#allocation5 + $0x1], 1 }
 0x287   :  { %316 = vsyncpa [#allocation8], 1 }
 0x288   :  { %317 = vsyncpa [#allocation6], 1 }
 0x289   :  { %319 = vsyncpa [#allocation6 + $0x1], 1 }

</bundles_post_ra>
